<compile_context>
chip_gen: v7x
topology: tpu7x:2x2x1
jax: 0.10.0
libtpu: 0.0.40
codegen_flags: <defaults>
</compile_context>

<pallas_src>
import jax
import jax.numpy as jnp
from jax.experimental import pallas as pl
from jax.experimental.pallas import tpu as pltpu


def _round_up(x: int, m: int) -> int:
    return (x + m - 1) // m * m


def _vmem_capacity_bytes() -> int:
    """Queried per-core VMEM capacity; conservative 64 MiB fallback."""
    try:
        return int(pltpu.get_tpu_info().vmem_capacity_bytes)
    except Exception:
        return 64 * 1024 * 1024


def _pick_hidden_tile(hidden: int, th: int) -> int:
    """Largest multiple of 128 <= th that divides hidden (else hidden itself).

    NOTE: if `hidden` is not a multiple of 128 this returns `hidden`, and the
    in-kernel gate slices are not lane-aligned — numerically correct but
    generates cross-lane shuffles; real models should use 128-aligned hidden.
    """
    if hidden <= th:
        return hidden
    cand = (th // 128) * 128
    while cand >= 128:
        if hidden % cand == 0:
            return cand
        cand -= 128
    return hidden


# ----------------------------- kernels ------------------------------------ #

def _swiglu_kernel_single(x_ref, w12_ref, b12_ref, w3_ref, b3_ref, o_ref):
    """nh == 1: no accumulator scratch, write output tile directly."""
    th = w3_ref.shape[0]
    hh = jnp.dot(x_ref[...], w12_ref[...], preferred_element_type=jnp.float32)
    hh = hh + b12_ref[...]
    h1 = hh[:, :th]
    h2 = hh[:, th:]
    gated = (h1 * jax.nn.sigmoid(h1)) * h2                 # SiLU gate, fp32
    out = jnp.dot(gated.astype(w3_ref.dtype), w3_ref[...],
                  preferred_element_type=jnp.float32) + b3_ref[...]
    o_ref[...] = out.astype(o_ref.dtype)


def _swiglu_kernel_multi(x_ref, w12_ref, b12_ref, w3_ref, b3_ref, o_ref,
                         acc_ref):
    """nh > 1: stream hidden chunks, accumulate in fp32 scratch."""
    h = pl.program_id(1)
    nh = pl.num_programs(1)
    th = w3_ref.shape[0]

    @pl.when(h == 0)
    def _():
        acc_ref[...] = jnp.zeros_like(acc_ref)

    # One fused MXU matmul for both gate projections of this hidden chunk.
    hh = jnp.dot(x_ref[...], w12_ref[...], preferred_element_type=jnp.float32)
    hh = hh + b12_ref[...]
    h1 = hh[:, :th]
    h2 = hh[:, th:]
    gated = (h1 * jax.nn.sigmoid(h1)) * h2                 # SiLU gate, fp32

    acc_ref[...] += jnp.dot(gated.astype(w3_ref.dtype), w3_ref[...],
                            preferred_element_type=jnp.float32)

    @pl.when(h == nh - 1)
    def _():
        o_ref[...] = (acc_ref[...] + b3_ref[...]).astype(o_ref.dtype)


# ----------------------------- wrapper ------------------------------------ #

def prepare_swiglu_params(w12, b12, w3, b3, *, th=None,
                          weight_dtype=jnp.bfloat16):
    """One-time (model-init) weight repacking — NOT per forward call.

    w12: (2H, C_in), b12: (2H,), w3: (C_out, H), b3: (C_out,) (torch layout).
    Returns pre-transposed, pre-tiled, chunk-interleaved operands.
    weight_dtype defaults to bf16 (recommended on all generations); pass
    jnp.float32 to keep full-precision weights/activations.
    """
    two_h, c_in = w12.shape
    hidden = two_h // 2
    c_out = w3.shape[0]

    if th is None:
        # 2048 on big-VMEM chips (v5e/v6e 128 MiB), 1024 on v7x (64 MiB).
        th = 2048 if _vmem_capacity_bytes() >= 100 * 1024 * 1024 else 1024
    th = _pick_hidden_tile(hidden, th)
    nh = hidden // th

    if weight_dtype is None:
        weight_dtype = w12.dtype

    # Pre-tiled chunk-interleaved gate weights: (nh, C_in, 2*th), so each
    # streamed chunk is a single fully contiguous HBM copy.
    w1t = w12[:hidden, :].T.reshape(c_in, nh, th)
    w2t = w12[hidden:, :].T.reshape(c_in, nh, th)
    w12i = jnp.transpose(jnp.concatenate([w1t, w2t], axis=-1), (1, 0, 2))
    w12i = w12i.astype(weight_dtype)                       # (nh, C_in, 2*th)

    b1 = b12[:hidden].reshape(nh, th)
    b2 = b12[hidden:].reshape(nh, th)
    b12i = jnp.concatenate([b1, b2], axis=-1).reshape(nh, 1, 2 * th)
    b12i = b12i.astype(jnp.float32)                        # (nh, 1, 2*th)

    w3t = w3.T.astype(weight_dtype)                        # (H, C_out), contiguous (th, C_out) row-chunks
    b3r = b3.reshape(1, c_out).astype(jnp.float32)

    return dict(
        w12i=w12i, b12i=b12i, w3t=w3t, b3r=b3r,
        th=th, hidden=hidden, in_features=c_in, out_features=c_out,
    )


def swiglu_ffn(x, params, *, tm=None):
    """x: (..., C_in) -> (..., C_out)."""
    *lead, c_in = x.shape
    assert c_in == params["in_features"]
    hidden, th, c_out = params["hidden"], params["th"], params["out_features"]
    nh = hidden // th

    M = 1
    for d in lead:
        M *= d

    vmem_cap = _vmem_capacity_bytes()

    # Big token tile: 512 default, 1024 for large M on big-VMEM chips.
    if tm is None:
        tm = 1024 if (M >= 4096 and vmem_cap >= 100 * 1024 * 1024) else 512
    tm = _round_up(max(tm, 256), 256)                 # full MXU passes (v6e/v7x)
    tm_eff = min(tm, _round_up(M, 256))               # don't over-tile tiny inputs
    grid_m = pl.cdiv(M, tm_eff)
    m_pad = grid_m * tm_eff

    w12i, b12i = params["w12i"], params["b12i"]
    w3t, b3r = params["w3t"], params["b3r"]
    compute_dtype = w12i.dtype
    wbytes = w12i.dtype.itemsize
    out_dtype = x.dtype

    # Cast activations to the weight/compute dtype ONCE in the wrapper (the x
    # tile is revisited for every hidden chunk inside the kernel).
    xf = x.reshape(M, c_in).astype(compute_dtype)
    if m_pad != M:                                    # arbitrary sequence lengths
        xf = jnp.pad(xf, ((0, m_pad - M), (0, 0)))

    # Explicit VMEM budget: double-buffered streamed blocks + scratch + temps,
    # clamped to the actual chip capacity (never over-request on v7x's 64 MiB).
    vmem_bytes = int(
        2 * tm_eff * c_in * xf.dtype.itemsize          # x tile
        + 2 * c_in * 2 * th * wbytes                   # fused gate-weight chunk
        + 2 * 2 * th * 4                               # gate bias chunk (fp32)
        + 2 * th * c_out * wbytes                      # w3 chunk
        + 2 * c_out * 4                                # b3
        + 2 * tm_eff * c_out * out_dtype.itemsize      # output tile
        + (tm_eff * c_out * 4 if nh > 1 else 0)        # fp32 accumulator scratch
        + 2 * tm_eff * 2 * th * 4                      # fp32 hh temporary
        + 2 * tm_eff * th * 4                          # fp32 gating temporaries
    )
    vmem_limit = min(max(int(vmem_bytes * 1.25), 32 * 1024 * 1024),
                     int(vmem_cap * 0.9))

    flops = 2 * M * (c_in * 2 * hidden + hidden * c_out)
    bytes_accessed = int(
        xf.size * xf.dtype.itemsize
        + grid_m * (w12i.size * wbytes + w3t.size * wbytes)   # weights re-streamed per M tile
        + b12i.size * 4 + b3r.size * 4
        + m_pad * c_out * out_dtype.itemsize
    )
    cost = pl.CostEstimate(flops=flops, transcendentals=M * hidden,
                           bytes_accessed=bytes_accessed)

    in_specs = [
        pl.BlockSpec((tm_eff, c_in), lambda i, h: (i, 0)),
        pl.BlockSpec((None, c_in, 2 * th), lambda i, h: (h, 0, 0)),  # contiguous chunk
        pl.BlockSpec((None, 1, 2 * th), lambda i, h: (h, 0, 0)),
        pl.BlockSpec((th, c_out), lambda i, h: (h, 0)),
        pl.BlockSpec((1, c_out), lambda i, h: (0, 0)),
    ]
    out_spec = pl.BlockSpec((tm_eff, c_out), lambda i, h: (i, 0))

    if nh == 1:
        kernel = _swiglu_kernel_single
        scratch = []
    else:
        kernel = _swiglu_kernel_multi
        scratch = [pltpu.VMEM((tm_eff, c_out), jnp.float32)]

    out = pl.pallas_call(
        kernel,
        out_shape=jax.ShapeDtypeStruct((m_pad, c_out), out_dtype),
        grid_spec=pltpu.PrefetchScalarGridSpec(
            num_scalar_prefetch=0,
            grid=(grid_m, nh),
            in_specs=in_specs,
            out_specs=out_spec,
            scratch_shapes=scratch,
        ),
        compiler_params=pltpu.CompilerParams(
            dimension_semantics=("parallel", "arbitrary"),
            vmem_limit_bytes=vmem_limit),
        cost_estimate=cost,
    )(xf, w12i, b12i, w3t, b3r)

    if m_pad != M:
        out = out[:M]
    return out.reshape(*lead, c_out)


# ----------------------------- reference / test ---------------------------- #

def swiglu_ffn_ref(x, w12, b12, w3, b3):
    x12 = jnp.einsum("...c,oc->...o", x, w12) + b12
    hidden = w12.shape[0] // 2
    x1, x2 = x12[..., :hidden], x12[..., hidden:]
    return jnp.einsum("...h,oh->...o", jax.nn.silu(x1) * x2, w3) + b3


def _run_case(key, B, N, c_in, hid, c_out, *, th=None, tm=None,
              weight_dtype=jnp.bfloat16):
    k_x, k_w12, k_b12, k_w3, k_b3 = jax.random.split(key, 5)
    x = jax.random.normal(k_x, (B, N, c_in), dtype=jnp.float32)
    w12 = jax.random.normal(k_w12, (2 * hid, c_in), dtype=jnp.float32) * 0.05
    b12 = jax.random.normal(k_b12, (2 * hid,), dtype=jnp.float32) * 0.05
    w3 = jax.random.normal(k_w3, (c_out, hid), dtype=jnp.float32) * 0.05
    b3 = jax.random.normal(k_b3, (c_out,), dtype=jnp.float32) * 0.05

    params = prepare_swiglu_params(w12, b12, w3, b3, th=th,
                                   weight_dtype=weight_dtype)
    out = jax.block_until_ready(swiglu_ffn(x, params, tm=tm))
    ref = swiglu_ffn_ref(x, w12, b12, w3, b3)

    assert out.shape == (B, N, c_out)
    # Dtype-aware tolerance: bf16 weights/activations quantize before the MXU.
    if jnp.dtype(weight_dtype) == jnp.float32:
        atol = rtol = 1e-4
    else:
        atol = rtol = 2e-2
    assert jnp.allclose(out, ref, atol=atol, rtol=rtol), "mismatch vs reference"


if __name__ == "__main__":
    key = jax.random.PRNGKey(0)
    k1, k2 = jax.random.split(key)

    # Case 1: module defaults (hidden = out = in), tiny shapes, fp32 weights,
    # exercises the nh == 1 direct-write kernel (no accumulator scratch).
    _run_case(k1, B=2, N=8, c_in=32, hid=32, c_out=32,
              weight_dtype=jnp.float32)

    # Case 2: default bf16 weights, hidden tiled into 2 chunks (lane-aligned
    # fused gate slices, fp32 accumulator) and token padding (M=20 -> 256).
    _run_case(k2, B=2, N=10, c_in=128, hid=256, c_out=128, th=128)

    print("KERNEL_OK")
</pallas_src>

<mosaic_0001>
module attributes {stable_mosaic.version = 11 : i64} {
  func.func @_swiglu_kernel_single(%arg0: i32, %arg1: i32, %arg2: memref<256x32xf32, #tpu.memory_space<vmem>>, %arg3: memref<1x32x64xf32, #tpu.memory_space<vmem>>, %arg4: memref<1x1x64xf32, #tpu.memory_space<vmem>>, %arg5: memref<32x32xf32, #tpu.memory_space<vmem>>, %arg6: memref<1x32xf32, #tpu.memory_space<vmem>>, %arg7: memref<256x32xf32, #tpu.memory_space<vmem>>) attributes {dimension_semantics = [#tpu.dimension_semantics<parallel>, #tpu.dimension_semantics<arbitrary>], iteration_bounds = array<i64: 1, 1>, scalar_prefetch = 0 : i64, scratch_operands = 0 : i64, tpu.core_type = #tpu.core_type<tc>, window_params = [{transform_indices = @transform_0, window_bounds = array<i64: 256, 32>}, {transform_indices = @transform_1, window_bounds = array<i64: 1, 32, 64>}, {transform_indices = @transform_2, window_bounds = array<i64: 1, 1, 64>}, {transform_indices = @transform_3, window_bounds = array<i64: 32, 32>}, {pipeline_mode = #tpu.pipeline_mode<synchronous>, transform_indices = @transform_4, window_bounds = array<i64: 1, 32>}, {transform_indices = @transform_5, window_bounds = array<i64: 256, 32>}]} {
    %c0 = arith.constant 0 : index
    %c0_0 = arith.constant 0 : index
    %0 = vector.load %arg2[%c0, %c0_0] : memref<256x32xf32, #tpu.memory_space<vmem>>, vector<256x32xf32>
    %c0_1 = arith.constant 0 : index
    %c0_2 = arith.constant 0 : index
    %c0_3 = arith.constant 0 : index
    %1 = vector.load %arg3[%c0_1, %c0_2, %c0_3] : memref<1x32x64xf32, #tpu.memory_space<vmem>>, vector<1x32x64xf32>
    %2 = vector.shape_cast %1 : vector<1x32x64xf32> to vector<32x64xf32>
    %cst = arith.constant dense<0.000000e+00> : vector<256x64xf32>
    %3 = tpu.matmul %0, %2, %cst {dimension_numbers = #tpu.dot_dimension_numbers<[1], [0], [0], [1], [0, 0, 1, 1], [], []>} : vector<256x32xf32>, vector<32x64xf32>, vector<256x64xf32> -> vector<256x64xf32>
    %c0_4 = arith.constant 0 : index
    %c0_5 = arith.constant 0 : index
    %c0_6 = arith.constant 0 : index
    %4 = vector.load %arg4[%c0_4, %c0_5, %c0_6] : memref<1x1x64xf32, #tpu.memory_space<vmem>>, vector<1x1x64xf32>
    %5 = vector.shape_cast %4 : vector<1x1x64xf32> to vector<1x64xf32>
    %6 = vector.broadcast %5 : vector<1x64xf32> to vector<256x64xf32>
    %7 = arith.addf %3, %6 : vector<256x64xf32>
    %8 = vector.extract_strided_slice %7 {offsets = [0, 0], sizes = [256, 32], strides = [1, 1]} : vector<256x64xf32> to vector<256x32xf32>
    %9 = vector.extract_strided_slice %7 {offsets = [0, 32], sizes = [256, 32], strides = [1, 1]} : vector<256x64xf32> to vector<256x32xf32>
    %10 = arith.negf %8 : vector<256x32xf32>
    %11 = math.exp %10 : vector<256x32xf32>
    %cst_7 = arith.constant 1.000000e+00 : f32
    %12 = vector.broadcast %cst_7 : f32 to vector<256x32xf32>
    %13 = arith.addf %12, %11 : vector<256x32xf32>
    %14 = arith.divf %12, %13 : vector<256x32xf32>
    %15 = arith.mulf %8, %14 : vector<256x32xf32>
    %16 = arith.mulf %15, %9 : vector<256x32xf32>
    %c0_8 = arith.constant 0 : index
    %c0_9 = arith.constant 0 : index
    %17 = vector.load %arg5[%c0_8, %c0_9] : memref<32x32xf32, #tpu.memory_space<vmem>>, vector<32x32xf32>
    %cst_10 = arith.constant dense<0.000000e+00> : vector<256x32xf32>
    %18 = tpu.matmul %16, %17, %cst_10 {dimension_numbers = #tpu.dot_dimension_numbers<[1], [0], [0], [1], [0, 0, 1, 1], [], []>} : vector<256x32xf32>, vector<32x32xf32>, vector<256x32xf32> -> vector<256x32xf32>
    %c0_11 = arith.constant 0 : index
    %c0_12 = arith.constant 0 : index
    %19 = vector.load %arg6[%c0_11, %c0_12] : memref<1x32xf32, #tpu.memory_space<vmem>>, vector<1x32xf32>
    %20 = vector.broadcast %19 : vector<1x32xf32> to vector<256x32xf32>
    %21 = arith.addf %18, %20 : vector<256x32xf32>
    %c0_13 = arith.constant 0 : index
    %c0_14 = arith.constant 0 : index
    %22 = vector.load %arg7[%c0_13, %c0_14] : memref<256x32xf32, #tpu.memory_space<vmem>>, vector<256x32xf32>
    tpu.vector_store %arg7[%c0_13, %c0_14], %21 {strides = array<i32>} : memref<256x32xf32, #tpu.memory_space<vmem>>, vector<256x32xf32>,
    return
  }
  func.func @transform_0(%arg0: i32, %arg1: i32) -> (i32, i32) {
    %c0_i32 = arith.constant 0 : i32
    %c0_i32_0 = arith.constant 0 : i32
    return %arg0, %c0_i32 : i32, i32
  }
  func.func @transform_1(%arg0: i32, %arg1: i32) -> (i32, i32, i32) {
    %c0_i32 = arith.constant 0 : i32
    %c0_i32_0 = arith.constant 0 : i32
    %c0_i32_1 = arith.constant 0 : i32
    return %arg1, %c0_i32, %c0_i32_0 : i32, i32, i32
  }
  func.func @transform_2(%arg0: i32, %arg1: i32) -> (i32, i32, i32) {
    %c0_i32 = arith.constant 0 : i32
    %c0_i32_0 = arith.constant 0 : i32
    %c0_i32_1 = arith.constant 0 : i32
    return %arg1, %c0_i32, %c0_i32_0 : i32, i32, i32
  }
  func.func @transform_3(%arg0: i32, %arg1: i32) -> (i32, i32) {
    %c0_i32 = arith.constant 0 : i32
    %c0_i32_0 = arith.constant 0 : i32
    return %arg1, %c0_i32 : i32, i32
  }
  func.func @transform_4(%arg0: i32, %arg1: i32) -> (i32, i32) {
    %c0_i32 = arith.constant 0 : i32
    %c0_i32_0 = arith.constant 0 : i32
    %c0_i32_1 = arith.constant 0 : i32
    return %c0_i32, %c0_i32_0 : i32, i32
  }
  func.func @transform_5(%arg0: i32, %arg1: i32) -> (i32, i32) {
    %c0_i32 = arith.constant 0 : i32
    %c0_i32_0 = arith.constant 0 : i32
    return %arg0, %c0_i32 : i32, i32
  }
}

</mosaic_0001>

<bundles_post_ra>
// kernel: tpu_custom_call.1
= control target key start
LH: loop header
LB: loop body
LE: loop exit
PB: predicated region body
PF: predicated region fallthrough
CT: control target
= control target key end

     0   :  { %vm63_vm0 = vcmask 261120   ;;  %s1564_s21 = smov 96   ;;  %s2173_s1 = inlined_call_operand.vmem [shape: f32[1,32,64], index: 1, kind: input, shape index: {}]   ;;  %s2174_s0 = inlined_call_operand.vmem [shape: f32[256,32], index: 0, kind: input, shape index: {}]   ;;  %s2175_s3 = inlined_call_operand.vmem [shape: f32[32,32], index: 3, kind: input, shape index: {}]   ;;  %s2176_s2 = inlined_call_operand.vmem [shape: f32[1,1,64], index: 2, kind: input, shape index: {}]   ;;  %s2177_s4 = inlined_call_operand.vmem [shape: f32[1,32], index: 4, kind: input, shape index: {}]   ;;  %s2178_s5 = inlined_call_operand.vmem [shape: f32[256,32], index: 5, kind: output, shape index: {}]  }
   0x1   :  { %v52_v0 = vld [vmem:[%s2173_s1] sm:$0xff]  ;;  %v53_v1 = vld [vmem:[%s2173_s1 + $0x8] sm:$0xff]  ;;  %v54_v2 = vld [vmem:[%s2173_s1 + $0x10] sm:$0xff] }
   0x2   :  { %v1419_v3 = vpack.c.bf16 %v53_v1, %v52_v0  ;;  %v55_v4 = vld [vmem:[%s2173_s1 + $0x18] sm:$0xff]  ;;  %v20_v5 = vld [vmem:[%s2174_s0] sm:$0xff]  ;;  %v21_v7 = vld [vmem:[%s2174_s0 + $0x8] sm:$0xff] }
   0x3   :  { %v1423_v6 = vpack.c.bf16 %v55_v4, %v54_v2  ;;  %1315 = vmatprep.mubr.msk.f32.mxu0 %vm63_vm0, %v20_v5  ;;  %v22_v8 = vld [vmem:[%s2174_s0 + $0x10] sm:$0xff]  ;;  %v23_v9 = vld [vmem:[%s2174_s0 + $0x18] sm:$0xff]  ;;  %v24_v10 = vld [vmem:[%s2174_s0 + $0x20] sm:$0xff] }
   0x4   :  { %1420 = vmatprep.subr.bf16.mxu0 %v1419_v3  ;;  %v25_v11 = vld [vmem:[%s2174_s0 + $0x28] sm:$0xff]  ;;  %v26_v12 = vld [vmem:[%s2174_s0 + $0x30] sm:$0xff]  ;;  %v27_v13 = vld [vmem:[%s2174_s0 + $0x38] sm:$0xff] }
   0x5   :  { %1422 = vmatpush3.bf16.msra.mxu0 %v1419_v3  ;;  %v28_v14 = vld [vmem:[%s2174_s0 + $0x40] sm:$0xff]  ;;  %v29_v15 = vld [vmem:[%s2174_s0 + $0x48] sm:$0xff]  ;;  %v30_v16 = vld [vmem:[%s2174_s0 + $0x50] sm:$0xff] }
   0x6   :  { %1424 = vmatprep.subr.bf16.mxu0 %v1423_v6  ;;  %v31_v17 = vld [vmem:[%s2174_s0 + $0x58] sm:$0xff]  ;;  %v32_v18 = vld [vmem:[%s2174_s0 + $0x60] sm:$0xff]  ;;  %v33_v19 = vld [vmem:[%s2174_s0 + $0x68] sm:$0xff] }
   0x7   :  { %v34_v20 = vld [vmem:[%s2174_s0 + $0x70] sm:$0xff]  ;;  %v35_v21 = vld [vmem:[%s2174_s0 + $0x78] sm:$0xff]  ;;  %v36_v22 = vld [vmem:[%s2174_s0 + $0x80] sm:$0xff] }
   0x8   :  { %v37_v23 = vld [vmem:[%s2174_s0 + $0x88] sm:$0xff]  ;;  %v38_v24 = vld [vmem:[%s2174_s0 + $0x90] sm:$0xff]  ;;  %v39_v25 = vld [vmem:[%s2174_s0 + $0x98] sm:$0xff] }
   0x9   :  { %1426 = vmatpush3.bf16.msra.mxu0 %v1423_v6  ;;  %v40_v26 = vld [vmem:[%s2174_s0 + $0xa0] sm:$0xff]  ;;  %v41_v27 = vld [vmem:[%s2174_s0 + $0xa8] sm:$0xff]  ;;  %v42_v28 = vld [vmem:[%s2174_s0 + $0xb0] sm:$0xff] }
   0xa   :  { %v43_v29 = vld [vmem:[%s2174_s0 + $0xb8] sm:$0xff]  ;;  %v44_v30 = vld [vmem:[%s2174_s0 + $0xc0] sm:$0xff]  ;;  %v45_v31 = vld [vmem:[%s2174_s0 + $0xc8] sm:$0xff] }
   0xb   :  { %v46_v32 = vld [vmem:[%s2174_s0 + $0xd0] sm:$0xff]  ;;  %v47_v33 = vld [vmem:[%s2174_s0 + $0xd8] sm:$0xff]  ;;  %v48_v34 = vld [vmem:[%s2174_s0 + $0xe0] sm:$0xff] }
   0xc   :  { %1316 = vmatmul.mubr.msk.f32.vlgmr.msra.gmra.mrb[0].mxu0 %vm63_vm0, %v21_v7  ;;  %v49_v35 = vld [vmem:[%s2174_s0 + $0xe8] sm:$0xff]  ;;  %v50_v36 = vld [vmem:[%s2174_s0 + $0xf0] sm:$0xff]  ;;  %v51_v37 = vld [vmem:[%s2174_s0 + $0xf8] sm:$0xff] }
   0xd   :  { %1318 = vmatprep.mubr.msk.f32.mxu0 %vm63_vm0, %v22_v8  ;;  %v769_v38 = vld [vmem:[%s2175_s3] sm:$0xff]  ;;  %v770_v39 = vld [vmem:[%s2175_s3 + $0x8] sm:$0xff]  ;;  %v771_v41 = vld [vmem:[%s2175_s3 + $0x10] sm:$0xff] }
   0xe   :  { %v1427_v40 = vpack.c.bf16 %v770_v39, %v769_v38  ;;  %v772_v42 = vld [vmem:[%s2175_s3 + $0x18] sm:$0xff]  ;;  %v1750_v44 = vld [vmem:[%s2176_s2] ss:$0 sm:$0xff] }
   0xf   :  { %v1431_v43 = vpack.c.bf16 %v772_v42, %v771_v41 }
  0x10   :  { %1319 = vmatmul.mubr.msk.f32.gmra.mrb[2].mxu0 %vm63_vm0, %v23_v9  ;;  %1428 = vmatprep.subr.bf16.mxu1 %v1427_v40 }
  0x11   :  { %1321 = vmatprep.mubr.msk.f32.mxu0 %vm63_vm0, %v24_v10  ;;  %1430 = vmatpush3.bf16.msra.mxu1 %v1427_v40 }
  0x12   :  { %1432 = vmatprep.subr.bf16.mxu1 %v1431_v43 }
  0x14   :  { %1322 = vmatmul.mubr.msk.f32.gmra.mrb[4].mxu0 %vm63_vm0, %v25_v11 }
  0x15   :  { %1324 = vmatprep.mubr.msk.f32.mxu0 %vm63_vm0, %v26_v12  ;;  %1434 = vmatpush3.bf16.msra.mxu1 %v1431_v43 }
  0x18   :  { %1325 = vmatmul.mubr.msk.f32.gmra.mrb[6].mxu0 %vm63_vm0, %v27_v13 }
  0x19   :  { %1327 = vmatprep.mubr.msk.f32.mxu0 %vm63_vm0, %v28_v14 }
  0x1c   :  { %1328 = vmatmul.mubr.msk.f32.gmra.mrb[8].mxu0 %vm63_vm0, %v29_v15 }
  0x1d   :  { %1330 = vmatprep.mubr.msk.f32.mxu0 %vm63_vm0, %v30_v16 }
  0x20   :  { %1331 = vmatmul.mubr.msk.f32.gmra.mrb[10].mxu0 %vm63_vm0, %v31_v17 }
  0x21   :  { %1333 = vmatprep.mubr.msk.f32.mxu0 %vm63_vm0, %v32_v18 }
  0x24   :  { %1334 = vmatmul.mubr.msk.f32.gmra.mrb[12].mxu0 %vm63_vm0, %v33_v19 }
  0x25   :  { %1336 = vmatprep.mubr.msk.f32.mxu0 %vm63_vm0, %v34_v20 }
  0x28   :  { %1337 = vmatmul.mubr.msk.f32.gmra.mrb[14].mxu0 %vm63_vm0, %v35_v21 }
  0x29   :  { %1339 = vmatprep.mubr.msk.f32.mxu0 %vm63_vm0, %v36_v22 }
  0x2c   :  { %1340 = vmatmul.mubr.msk.f32.gmra.mrb[16].mxu0 %vm63_vm0, %v37_v23 }
  0x2d   :  { %1342 = vmatprep.mubr.msk.f32.mxu0 %vm63_vm0, %v38_v24 }
  0x30   :  { %1343 = vmatmul.mubr.msk.f32.gmra.mrb[18].mxu0 %vm63_vm0, %v39_v25 }
  0x31   :  { %1345 = vmatprep.mubr.msk.f32.mxu0 %vm63_vm0, %v40_v26 }
  0x34   :  { %1346 = vmatmul.mubr.msk.f32.gmra.mrb[20].mxu0 %vm63_vm0, %v41_v27 }
  0x35   :  { %1348 = vmatprep.mubr.msk.f32.mxu0 %vm63_vm0, %v42_v28 }
  0x38   :  { %1349 = vmatmul.mubr.msk.f32.gmra.mrb[22].mxu0 %vm63_vm0, %v43_v29 }
  0x39   :  { %1351 = vmatprep.mubr.msk.f32.mxu0 %vm63_vm0, %v44_v30 }
  0x3c   :  { %1352 = vmatmul.mubr.msk.f32.gmra.mrb[24].mxu0 %vm63_vm0, %v45_v31 }
  0x3d   :  { %1354 = vmatprep.mubr.msk.f32.mxu0 %vm63_vm0, %v46_v32 }
  0x40   :  { %1355 = vmatmul.mubr.msk.f32.gmra.mrb[26].mxu0 %vm63_vm0, %v47_v33 }
  0x41   :  { %1357 = vmatprep.mubr.msk.f32.mxu0 %vm63_vm0, %v48_v34 }
  0x44   :  { %1358 = vmatmul.mubr.msk.f32.gmra.mrb[28].mxu0 %vm63_vm0, %v49_v35 }
  0x45   :  { %1360 = vmatprep.mubr.msk.f32.mxu0 %vm63_vm0, %v50_v36 }
  0x48   :  { %1361 = vmatmul.mubr.msk.f32.gmra.mrb[30].mxu0 %vm63_vm0, %v51_v37 }
  0xdf   :  { %v1317_v45 = vpop.f32.mrb[0].mxu0 }
  0xe0   :  { %v226_v46 = vpop.f32.mrb[1].mxu0  ;;  %v1758_v50 = vadd.f32 %v1317_v45, %v1750_v44 }
  0xe1   :  { %v1753_v47 = vadd.f32 %v1750_v44, %v226_v46 }
  0xe3   :  { %v1320_v48 = vpop.f32.mrb[2].mxu0  ;;  %641 = vrot.lane.b32.xlu0 %v1753_v47, %s1564_s21  ;;  %v1170_v46 = vmul.f32 -1.442695, %v1753_v47 }
  0xe4   :  { %v236_v49 = vpop.f32.mrb[3].mxu0  ;;  %v1768_v54 = vadd.f32 %v1320_v48, %v1750_v44  ;;  %v1171_v48 = vmul.f32 -1.442695, %v1758_v50 }
  0xe5   :  { %v1761_v51 = vadd.f32 %v1750_v44, %v236_v49  ;;  %1436 = vpow2.f32 %v1170_v46 }
  0xe6   :  { %1438 = vpow2.f32 %v1171_v48 }
  0xe7   :  { %v1323_v52 = vpop.f32.mrb[4].mxu0  ;;  %645 = vrot.lane.b32.xlu1 %v1761_v51, %s1564_s21  ;;  %643 = vrot.lane.b32.xlu0 %v1758_v50, %s1564_s21  ;;  %v1172_v49 = vmul.f32 -1.442695, %v1761_v51 }
  0xe8   :  { %v246_v53 = vpop.f32.mrb[5].mxu0  ;;  %v1778_v58 = vadd.f32 %v1323_v52, %v1750_v44 }
  0xe9   :  { %v1771_v55 = vadd.f32 %v1750_v44, %v246_v53  ;;  %1440 = vpow2.f32 %v1172_v49 }
  0xea   :  { %v1175_v52 = vmul.f32 -1.442695, %v1778_v58 }
  0xeb   :  { %v1326_v56 = vpop.f32.mrb[6].mxu0  ;;  %647 = vrot.lane.b32.xlu1 %v1768_v54, %s1564_s21  ;;  %649 = vrot.lane.b32.xlu0 %v1771_v55, %s1564_s21  ;;  %v1174_v53 = vmul.f32 -1.442695, %v1771_v55 }
  0xec   :  { %v256_v57 = vpop.f32.mrb[7].mxu0  ;;  %v1788_v62 = vadd.f32 %v1326_v56, %v1750_v44 }
  0xed   :  { %v1781_v59 = vadd.f32 %v1750_v44, %v256_v57 }
  0xee   :  { %v1177_v56 = vmul.f32 -1.442695, %v1788_v62 }
  0xef   :  { %v1329_v60 = vpop.f32.mrb[8].mxu0  ;;  %651 = vrot.lane.b32.xlu1 %v1778_v58, %s1564_s21  ;;  %653 = vrot.lane.b32.xlu0 %v1781_v59, %s1564_s21  ;;  %v1176_v57 = vmul.f32 -1.442695, %v1781_v59 }
  0xf0   :  { %v266_v61 = vpop.f32.mrb[9].mxu0  ;;  %v1798_v2 = vadd.f32 %v1329_v60, %v1750_v44  ;;  %v1437_v60 = vpop.eup %1436 }
  0xf1   :  { %v1791_v63 = vadd.f32 %v1750_v44, %v266_v61 }
  0xf3   :  { %v1332_v0 = vpop.f32.mrb[10].mxu0  ;;  %655 = vrot.lane.b32.xlu1 %v1788_v62, %s1564_s21  ;;  %657 = vrot.lane.b32.xlu0 %v1791_v63, %s1564_s21  ;;  %v1178_v61 = vmul.f32 -1.442695, %v1791_v63 }
  0xf4   :  { %v276_v1 = vpop.f32.mrb[11].mxu0  ;;  %v1808_v6 = vadd.f32 %v1332_v0, %v1750_v44  ;;  %v1439_v0 = vpop.eup %1438 }
  0xf5   :  { %v1801_v3 = vadd.f32 %v1750_v44, %v276_v1  ;;  %v481_v1 = vadd.f32 1.0, %v1437_v60 }
  0xf7   :  { %v1335_v4 = vpop.f32.mrb[12].mxu0  ;;  %659 = vrot.lane.b32.xlu1 %v1798_v2, %s1564_s21  ;;  %661 = vrot.lane.b32.xlu0 %v1801_v3, %s1564_s21 }
  0xf8   :  { %v286_v5 = vpop.f32.mrb[13].mxu0  ;;  %v1818_v10 = vadd.f32 %v1335_v4, %v1750_v44  ;;  %v1441_v4 = vpop.eup %1440 }
  0xf9   :  { %v1811_v7 = vadd.f32 %v1750_v44, %v286_v5  ;;  %v1179_v5 = vmul.f32 -1.442695, %v1798_v2 }
  0xfb   :  { %v1338_v8 = vpop.f32.mrb[14].mxu0  ;;  %663 = vrot.lane.b32.xlu1 %v1808_v6, %s1564_s21  ;;  %665 = vrot.lane.b32.xlu0 %v1811_v7, %s1564_s21 }
  0xfc   :  { %v296_v9 = vpop.f32.mrb[15].mxu0  ;;  %v1828_v14 = vadd.f32 %v1338_v8, %v1750_v44  ;;  %v1180_v8 = vmul.f32 -1.442695, %v1801_v3 }
  0xfd   :  { %v1821_v11 = vadd.f32 %v1750_v44, %v296_v9  ;;  %v482_v9 = vadd.f32 1.0, %v1439_v0 }
  0xfe   :  { %v1185_v48 = vmul.f32 -1.442695, %v1828_v14 }
  0xff   :  { %v1341_v12 = vpop.f32.mrb[16].mxu0  ;;  %667 = vrot.lane.b32.xlu1 %v1818_v10, %s1564_s21  ;;  %669 = vrot.lane.b32.xlu0 %v1821_v11, %s1564_s21 }
 0x100   :  { %v306_v13 = vpop.f32.mrb[17].mxu0  ;;  %v1838_v18 = vadd.f32 %v1341_v12, %v1750_v44 }
 0x101   :  { %v1831_v15 = vadd.f32 %v1750_v44, %v306_v13  ;;  %v483_v13 = vadd.f32 1.0, %v1441_v4 }
 0x103   :  { %v1344_v16 = vpop.f32.mrb[18].mxu0  ;;  %671 = vrot.lane.b32.xlu1 %v1828_v14, %s1564_s21  ;;  %673 = vrot.lane.b32.xlu0 %v1831_v15, %s1564_s21 }
 0x104   :  { %v316_v17 = vpop.f32.mrb[19].mxu0  ;;  %v1848_v22 = vadd.f32 %v1344_v16, %v1750_v44 }
 0x105   :  { %v1841_v19 = vadd.f32 %v1750_v44, %v316_v17  ;;  %v1181_v17 = vmul.f32 -1.442695, %v1808_v6 }
 0x107   :  { %v1347_v20 = vpop.f32.mrb[20].mxu0  ;;  %675 = vrot.lane.b32.xlu1 %v1838_v18, %s1564_s21  ;;  %677 = vrot.lane.b32.xlu0 %v1841_v19, %s1564_s21 }
 0x108   :  { %v326_v21 = vpop.f32.mrb[21].mxu0  ;;  %v1858_v26 = vadd.f32 %v1347_v20, %v1750_v44 }
 0x109   :  { %v1851_v23 = vadd.f32 %v1750_v44, %v326_v21  ;;  %v1182_v21 = vmul.f32 -1.442695, %v1811_v7 }
 0x10b   :  { %v1350_v24 = vpop.f32.mrb[22].mxu0  ;;  %679 = vrot.lane.b32.xlu1 %v1848_v22, %s1564_s21  ;;  %681 = vrot.lane.b32.xlu0 %v1851_v23, %s1564_s21 }
 0x10c   :  { %v336_v25 = vpop.f32.mrb[23].mxu0  ;;  %v1868_v30 = vadd.f32 %v1350_v24, %v1750_v44 }
 0x10d   :  { %v1861_v27 = vadd.f32 %v1750_v44, %v336_v25 }
 0x10f   :  { %v1353_v28 = vpop.f32.mrb[24].mxu0  ;;  %683 = vrot.lane.b32.xlu1 %v1858_v26, %s1564_s21  ;;  %685 = vrot.lane.b32.xlu0 %v1861_v27, %s1564_s21 }
 0x110   :  { %v346_v29 = vpop.f32.mrb[25].mxu0  ;;  %v1878_v34 = vadd.f32 %v1353_v28, %v1750_v44 }
 0x111   :  { %v1871_v31 = vadd.f32 %v1750_v44, %v346_v29 }
 0x113   :  { %v1356_v32 = vpop.f32.mrb[26].mxu0  ;;  %687 = vrot.lane.b32.xlu1 %v1868_v30, %s1564_s21  ;;  %689 = vrot.lane.b32.xlu0 %v1871_v31, %s1564_s21 }
 0x114   :  { %v356_v33 = vpop.f32.mrb[27].mxu0  ;;  %v1888_v38 = vadd.f32 %v1356_v32, %v1750_v44 }
 0x115   :  { %v1881_v35 = vadd.f32 %v1750_v44, %v356_v33  ;;  %v1183_v33 = vmul.f32 -1.442695, %v1818_v10 }
 0x117   :  { %v1359_v36 = vpop.f32.mrb[28].mxu0  ;;  %691 = vrot.lane.b32.xlu1 %v1878_v34, %s1564_s21  ;;  %693 = vrot.lane.b32.xlu0 %v1881_v35, %s1564_s21 }
 0x118   :  { %v366_v37 = vpop.f32.mrb[29].mxu0  ;;  %v1901_v43 = vadd.f32 %v1359_v36, %v1750_v44 }
 0x119   :  { %v1891_v39 = vadd.f32 %v1750_v44, %v366_v37 }
 0x11b   :  { %v1362_v40 = vpop.f32.mrb[30].mxu0  ;;  %695 = vrot.lane.b32.xlu1 %v1888_v38, %s1564_s21  ;;  %697 = vrot.lane.b32.xlu0 %v1891_v39, %s1564_s21 }
 0x11c   :  { %v1898_v41 = vadd.f32 %v1362_v40, %v1750_v44  ;;  %v376_v42 = vpop.f32.mrb[31].mxu0  ;;  %v1184_v40 = vmul.f32 -1.442695, %v1821_v11 }
 0x11d   :  { %v1904_v45 = vadd.f32 %v1750_v44, %v376_v42  ;;  %v1173_v44 = vmul.f32 -1.442695, %v1768_v54 }
 0x11f   :  { %699 = vrot.lane.b32.xlu1 %v1901_v43, %s1564_s21  ;;  %701 = vrot.lane.b32.xlu0 %v1904_v45, %s1564_s21  ;;  %1442 = vpow2.f32 %v1173_v44 }
 0x120   :  { %1444 = vpow2.f32 %v1175_v52 }
 0x121   :  { %1446 = vpow2.f32 %v1174_v53  ;;  %v1186_v53 = vmul.f32 -1.442695, %v1831_v15 }
 0x122   :  { %1448 = vpow2.f32 %v1177_v56 }
 0x123   :  { %703 = vrot.lane.b32.xlu1 %v1898_v41, %s1564_s21  ;;  %1450 = vpow2.f32 %v1176_v57  ;;  %v1187_v57 = vmul.f32 -1.442695, %v1838_v18 }
 0x124   :  { %1452 = vpow2.f32 %v1178_v61 }
 0x125   :  { %1454 = vrcp.f32 %v481_v1 }
 0x126   :  { %1456 = vpow2.f32 %v1179_v5 }
 0x127   :  { %1458 = vpow2.f32 %v1180_v8 }
 0x128   :  { %1460 = vrcp.f32 %v482_v9  ;;  %v1188_v9 = vmul.f32 -1.442695, %v1841_v19 }
 0x129   :  { %v1443_v12 = vpop.eup %1442  ;;  %1462 = vrcp.f32 %v483_v13 }
 0x12a   :  { %v1445_v16 = vpop.eup %1444  ;;  %v484_v24 = vadd.f32 1.0, %v1443_v12  ;;  %1464 = vpow2.f32 %v1181_v17 }
 0x12b   :  { %v1447_v20 = vpop.eup %1446  ;;  %v486_v28 = vadd.f32 1.0, %v1445_v16  ;;  %1466 = vpow2.f32 %v1182_v21  ;;  %v1189_v16 = vmul.f32 -1.442695, %v1848_v22 }
 0x12c   :  { %v1449_v25 = vpop.eup %1448  ;;  %v485_v29 = vadd.f32 1.0, %v1447_v20  ;;  %1468 = vrcp.f32 %v484_v24 }
 0x12d   :  { %v1451_v32 = vpop.eup %1450  ;;  %v488_v36 = vadd.f32 1.0, %v1449_v25  ;;  %1470 = vrcp.f32 %v486_v28 }
 0x12e   :  { %v1453_v37 = vpop.eup %1452  ;;  %1472 = vrcp.f32 %v485_v29  ;;  %v487_v42 = vadd.f32 1.0, %v1451_v32 }
 0x12f   :  { %v1455_v46 = vpop.eup %1454  ;;  %1474 = vpow2.f32 %v1183_v33  ;;  %v489_v44 = vadd.f32 1.0, %v1453_v37  ;;  %v1190_v33 = vmul.f32 -1.442695, %v1851_v23 }
 0x130   :  { %v1457_v49 = vpop.eup %1456  ;;  %1476 = vrcp.f32 %v488_v36  ;;  %v577_v0 = vmul.f32 %v1455_v46, %v1753_v47 }
 0x131   :  { %v1459_v52 = vpop.eup %1458  ;;  %1478 = vpow2.f32 %v1184_v40  ;;  %v490_v61 = vadd.f32 1.0, %v1457_v49 }
 0x132   :  { %v1461_v56 = vpop.eup %1460  ;;  %1480 = vrcp.f32 %v487_v42  ;;  %v491_v4 = vadd.f32 1.0, %v1459_v52  ;;  %v1191_v42 = vmul.f32 -1.442695, %v1858_v26 }
 0x133   :  { %v1463_v60 = vpop.eup %1462  ;;  %1482 = vpow2.f32 %v1185_v48  ;;  %v578_v21 = vmul.f32 %v1461_v56, %v1758_v50  ;;  %v1192_v56 = vmul.f32 -1.442695, %v1861_v27 }
 0x134   :  { %v1465_v1 = vpop.eup %1464  ;;  %1484 = vrcp.f32 %v489_v44  ;;  %v579_v47 = vmul.f32 %v1463_v60, %v1761_v51 }
 0x135   :  { %v1467_v8 = vpop.eup %1466  ;;  %1486 = vpow2.f32 %v1186_v53  ;;  %v492_v20 = vadd.f32 1.0, %v1465_v1 }
 0x136   :  { %v1469_v13 = vpop.eup %1468  ;;  %1488 = vpow2.f32 %v1187_v57  ;;  %v493_v25 = vadd.f32 1.0, %v1467_v8 }
 0x137   :  { %v1471_v17 = vpop.eup %1470  ;;  %1490 = vrcp.f32 %v490_v61  ;;  %v580_v50 = vmul.f32 %v1469_v13, %v1768_v54  ;;  %v1193_v54 = vmul.f32 -1.442695, %v1868_v30 }
 0x138   :  { %v1473_v24 = vpop.eup %1472  ;;  %1492 = vrcp.f32 %v491_v4 }
 0x139   :  { %v1475_v32 = vpop.eup %1474  ;;  %1494 = vpow2.f32 %v1188_v9  ;;  %v581_v51 = vmul.f32 %v1473_v24, %v1771_v55  ;;  %v582_v55 = vmul.f32 %v1471_v17, %v1778_v58 }
 0x13a   :  { %v1477_v40 = vpop.eup %1476  ;;  %1496 = vpow2.f32 %v1189_v16  ;;  %v494_v49 = vadd.f32 1.0, %v1475_v32  ;;  %v1194_v16 = vmul.f32 -1.442695, %v1871_v31 }
 0x13b   :  { %v1479_v46 = vpop.eup %1478  ;;  %1498 = vrcp.f32 %v492_v20 }
 0x13c   :  { %v1481_v48 = vpop.eup %1480  ;;  %1500 = vrcp.f32 %v493_v25 }
 0x13d   :  { %v1483_v53 = vpop.eup %1482  ;;  %1502 = vpow2.f32 %v1190_v33  ;;  %v583_v4 = vmul.f32 %v1481_v48, %v1781_v59  ;;  %v584_v59 = vmul.f32 %v1477_v40, %v1788_v62 }
 0x13e   :  { %v1485_v61 = vpop.eup %1484  ;;  %1504 = vpow2.f32 %v1191_v42  ;;  %v496_v8 = vadd.f32 1.0, %v1483_v53 }
 0x13f   :  { %v1487_v1 = vpop.eup %1486  ;;  %1506 = vrcp.f32 %v494_v49  ;;  %v585_v17 = vmul.f32 %v1485_v61, %v1791_v63 }
 0x140   :  { %1508 = vpow2.f32 %v1192_v56  ;;  %v497_v24 = vadd.f32 1.0, %v1487_v1  ;;  %v1198_v56 = vmul.f32 -1.442695, %v1891_v39 }
 0x155   :  { %v642_v5 = vpop.permute.xlu0 %641 }
 0x156   :  { %v737_v12 = vmul.f32 %v642_v5, %v577_v0  ;;  %v495_v0 = vadd.f32 1.0, %v1479_v46  ;;  %v1489_v5 = vpop.eup %1488 }
 0x157   :  { %v1491_v13 = vpop.eup %1490  ;;  %v498_v58 = vadd.f32 1.0, %v1489_v5 }
 0x158   :  { %1371 = vmatprep.mubr.msk.f32.mxu1 %vm63_vm0, %v737_v12  ;;  %1510 = vrcp.f32 %v495_v0  ;;  %v586_v40 = vmul.f32 %v1491_v13, %v1798_v2 }
 0x159   :  { %v646_v28 = vpop.permute.xlu1 %645  ;;  %v644_v29 = vpop.permute.xlu0 %643  ;;  %1512 = vpow2.f32 %v1193_v54 }
 0x15a   :  { %v739_v36 = vmul.f32 %v646_v28, %v579_v47  ;;  %v738_v37 = vmul.f32 %v644_v29, %v578_v21  ;;  %v1493_v21 = vpop.eup %1492  ;;  %1514 = vrcp.f32 %v496_v8  ;;  %v1195_v29 = vmul.f32 -1.442695, %v1878_v34 }
 0x15b   :  { %v1495_v25 = vpop.eup %1494  ;;  %1516 = vpow2.f32 %v1194_v16  ;;  %v587_v48 = vmul.f32 %v1493_v21, %v1801_v3 }
 0x15c   :  { %1372 = vmatmul.mubr.msk.f32.vlgmr.msra.gmra.mrb[0].mxu1 %vm63_vm0, %v738_v37  ;;  %v1497_v28 = vpop.eup %1496  ;;  %v1196_v37 = vmul.f32 -1.442695, %v1881_v35  ;;  %1518 = vrcp.f32 %v497_v24 }
 0x15d   :  { %v648_v44 = vpop.permute.xlu1 %647  ;;  %v650_v52 = vpop.permute.xlu0 %649  ;;  %1374 = vmatprep.mubr.msk.f32.mxu1 %vm63_vm0, %v739_v36  ;;  %1520 = vrcp.f32 %v498_v58  ;;  %v500_v63 = vadd.f32 1.0, %v1497_v28  ;;  %v1201_v28 = vmul.f32 -1.442695, %v1898_v41 }
 0x15e   :  { %v740_v57 = vmul.f32 %v648_v44, %v580_v50  ;;  %v741_v60 = vmul.f32 %v650_v52, %v581_v51  ;;  %v1499_v36 = vpop.eup %1498  ;;  %v499_v51 = vadd.f32 1.0, %v1495_v25  ;;  %1522 = vpow2.f32 %v1195_v29 }
 0x15f   :  { %v1501_v50 = vpop.eup %1500  ;;  %v1197_v44 = vmul.f32 -1.442695, %v1888_v38  ;;  %1524 = vpow2.f32 %v1196_v37  ;;  %v588_v3 = vmul.f32 %v1499_v36, %v1808_v6 }
 0x160   :  { %1375 = vmatmul.mubr.msk.f32.gmra.mrb[2].mxu1 %vm63_vm0, %v740_v57  ;;  %v1503_v62 = vpop.eup %1502  ;;  %1526 = vrcp.f32 %v499_v51  ;;  %v589_v54 = vmul.f32 %v1501_v50, %v1811_v7 }
 0x161   :  { %v652_v9 = vpop.permute.xlu1 %651  ;;  %v654_v12 = vpop.permute.xlu0 %653  ;;  %1377 = vmatprep.mubr.msk.f32.mxu1 %vm63_vm0, %v741_v60  ;;  %v501_v0 = vadd.f32 1.0, %v1503_v62  ;;  %1528 = vrcp.f32 %v500_v63 }
 0x162   :  { %v742_v20 = vmul.f32 %v652_v9, %v582_v55  ;;  %v743_v47 = vmul.f32 %v654_v12, %v583_v4  ;;  %v1505_v49 = vpop.eup %1504  ;;  %1530 = vpow2.f32 %v1197_v44  ;;  %v1199_v4 = vmul.f32 -1.442695, %v1901_v43 }
 0x163   :  { %v1507_v61 = vpop.eup %1506  ;;  %v502_v2 = vadd.f32 1.0, %v1505_v49  ;;  %1532 = vpow2.f32 %v1198_v56  ;;  %v1200_v12 = vmul.f32 -1.442695, %v1904_v45 }
 0x164   :  { %1378 = vmatmul.mubr.msk.f32.gmra.mrb[4].mxu1 %vm63_vm0, %v742_v20  ;;  %v1509_v1 = vpop.eup %1508  ;;  %1534 = vrcp.f32 %v501_v0  ;;  %v590_v7 = vmul.f32 %v1507_v61, %v1818_v10 }
 0x165   :  { %v656_v32 = vpop.permute.xlu1 %655  ;;  %v658_v33 = vpop.permute.xlu0 %657  ;;  %1380 = vmatprep.mubr.msk.f32.mxu1 %vm63_vm0, %v743_v47  ;;  %v503_v47 = vadd.f32 1.0, %v1509_v1  ;;  %1536 = vrcp.f32 %v502_v2 }
 0x166   :  { %v744_v42 = vmul.f32 %v656_v32, %v584_v59  ;;  %v745_v46 = vmul.f32 %v658_v33, %v585_v17  ;;  %v1511_v55 = vpop.eup %1510  ;;  %1538 = vpow2.f32 %v1199_v4 }
 0x167   :  { %v1513_v9 = vpop.eup %1512  ;;  %v591_v21 = vmul.f32 %v1511_v55, %v1821_v11  ;;  %1540 = vpow2.f32 %v1200_v12 }
 0x168   :  { %1381 = vmatmul.mubr.msk.f32.gmra.mrb[6].mxu1 %vm63_vm0, %v744_v42  ;;  %v1515_v20 = vpop.eup %1514  ;;  %v504_v25 = vadd.f32 1.0, %v1513_v9  ;;  %1542 = vrcp.f32 %v503_v47 }
 0x169   :  { %v660_v52 = vpop.permute.xlu1 %659  ;;  %v662_v53 = vpop.permute.xlu0 %661  ;;  %1383 = vmatprep.mubr.msk.f32.mxu1 %vm63_vm0, %v745_v46  ;;  %v592_v10 = vmul.f32 %v1515_v20, %v1828_v14 }
 0x16a   :  { %v746_v57 = vmul.f32 %v660_v52, %v586_v40  ;;  %v747_v60 = vmul.f32 %v662_v53, %v587_v48  ;;  %v1517_v6 = vpop.eup %1516  ;;  %1544 = vrcp.f32 %v504_v25 }
 0x16b   :  { %v1519_v24 = vpop.eup %1518  ;;  %v505_v36 = vadd.f32 1.0, %v1517_v6  ;;  %1546 = vpow2.f32 %v1201_v28 }
 0x16c   :  { %1384 = vmatmul.mubr.msk.f32.gmra.mrb[8].mxu1 %vm63_vm0, %v746_v57  ;;  %v1521_v17 = vpop.eup %1520  ;;  %v593_v11 = vmul.f32 %v1519_v24, %v1831_v15 }
 0x16d   :  { %v664_v5 = vpop.permute.xlu1 %663  ;;  %v666_v8 = vpop.permute.xlu0 %665  ;;  %1386 = vmatprep.mubr.msk.f32.mxu1 %vm63_vm0, %v747_v60  ;;  %1548 = vrcp.f32 %v505_v36  ;;  %v594_v14 = vmul.f32 %v1521_v17, %v1838_v18 }
 0x16e   :  { %v748_v13 = vmul.f32 %v664_v5, %v588_v3  ;;  %v749_v16 = vmul.f32 %v666_v8, %v589_v54  ;;  %v1523_v33 = vpop.eup %1522 }
 0x16f   :  { %v1525_v37 = vpop.eup %1524  ;;  %v506_v62 = vadd.f32 1.0, %v1523_v33 }
 0x170   :  { %1387 = vmatmul.mubr.msk.f32.gmra.mrb[10].mxu1 %vm63_vm0, %v748_v13  ;;  %v1527_v42 = vpop.eup %1526  ;;  %v507_v49 = vadd.f32 1.0, %v1525_v37 }
 0x171   :  { %v668_v58 = vpop.permute.xlu1 %667  ;;  %v670_v59 = vpop.permute.xlu0 %669  ;;  %1389 = vmatprep.mubr.msk.f32.mxu1 %vm63_vm0, %v749_v16  ;;  %v595_v15 = vmul.f32 %v1527_v42, %v1841_v19  ;;  %1550 = vrcp.f32 %v506_v62 }
 0x172   :  { %v750_v29 = vmul.f32 %v668_v58, %v590_v7  ;;  %v751_v32 = vmul.f32 %v670_v59, %v591_v21  ;;  %v1529_v51 = vpop.eup %1528  ;;  %1552 = vrcp.f32 %v507_v49 }
 0x173   :  { %v1531_v48 = vpop.eup %1530  ;;  %v596_v18 = vmul.f32 %v1529_v51, %v1848_v22 }
 0x174   :  { %1390 = vmatmul.mubr.msk.f32.gmra.mrb[12].mxu1 %vm63_vm0, %v750_v29  ;;  %v1533_v44 = vpop.eup %1532  ;;  %v508_v60 = vadd.f32 1.0, %v1531_v48 }
 0x175   :  { %v672_v46 = vpop.permute.xlu1 %671  ;;  %v674_v50 = vpop.permute.xlu0 %673  ;;  %1392 = vmatprep.mubr.msk.f32.mxu1 %vm63_vm0, %v751_v32  ;;  %v509_v2 = vadd.f32 1.0, %v1533_v44 }
 0x176   :  { %v752_v63 = vmul.f32 %v672_v46, %v592_v10  ;;  %v753_v40 = vmul.f32 %v674_v50, %v593_v11  ;;  %v1535_v52 = vpop.eup %1534  ;;  %1554 = vrcp.f32 %v508_v60 }
 0x177   :  { %v1537_v57 = vpop.eup %1536  ;;  %v597_v19 = vmul.f32 %v1535_v52, %v1851_v23  ;;  %1556 = vrcp.f32 %v509_v2 }
 0x178   :  { %1393 = vmatmul.mubr.msk.f32.gmra.mrb[14].mxu1 %vm63_vm0, %v752_v63  ;;  %v1539_v1 = vpop.eup %1538  ;;  %v598_v20 = vmul.f32 %v1537_v57, %v1858_v26 }
 0x179   :  { %v676_v53 = vpop.permute.xlu1 %675  ;;  %v678_v56 = vpop.permute.xlu0 %677  ;;  %1395 = vmatprep.mubr.msk.f32.mxu1 %vm63_vm0, %v753_v40  ;;  %v510_v5 = vadd.f32 1.0, %v1539_v1 }
 0x17a   :  { %v754_v61 = vmul.f32 %v676_v53, %v594_v14  ;;  %v755_v0 = vmul.f32 %v678_v56, %v595_v15  ;;  %v1541_v3 = vpop.eup %1540 }
 0x17b   :  { %v1543_v54 = vpop.eup %1542  ;;  %v511_v13 = vadd.f32 1.0, %v1541_v3  ;;  %1558 = vrcp.f32 %v510_v5 }
 0x17c   :  { %1396 = vmatmul.mubr.msk.f32.gmra.mrb[16].mxu1 %vm63_vm0, %v754_v61  ;;  %v1545_v12 = vpop.eup %1544  ;;  %v599_v22 = vmul.f32 %v1543_v54, %v1861_v27 }
 0x17d   :  { %v680_v55 = vpop.permute.xlu1 %679  ;;  %v682_v4 = vpop.permute.xlu0 %681  ;;  %1398 = vmatprep.mubr.msk.f32.mxu1 %vm63_vm0, %v755_v0  ;;  %1560 = vrcp.f32 %v511_v13  ;;  %v600_v58 = vmul.f32 %v1545_v12, %v1868_v30 }
 0x17e   :  { %v756_v8 = vmul.f32 %v680_v55, %v596_v18  ;;  %v757_v9 = vmul.f32 %v682_v4, %v597_v19  ;;  %v1547_v16 = vpop.eup %1546 }
 0x17f   :  { %v1549_v23 = vpop.eup %1548  ;;  %v512_v24 = vadd.f32 1.0, %v1547_v16 }
 0x180   :  { %1399 = vmatmul.mubr.msk.f32.gmra.mrb[18].mxu1 %vm63_vm0, %v756_v8  ;;  %v1551_v25 = vpop.eup %1550  ;;  %v601_v59 = vmul.f32 %v1549_v23, %v1871_v31 }
 0x181   :  { %v684_v47 = vpop.permute.xlu1 %683  ;;  %v686_v6 = vpop.permute.xlu0 %685  ;;  %1401 = vmatprep.mubr.msk.f32.mxu1 %vm63_vm0, %v757_v9  ;;  %1562 = vrcp.f32 %v512_v24  ;;  %v602_v33 = vmul.f32 %v1551_v25, %v1878_v34 }
 0x182   :  { %v758_v7 = vmul.f32 %v684_v47, %v598_v20  ;;  %v759_v21 = vmul.f32 %v686_v6, %v599_v22  ;;  %v1553_v26 = vpop.eup %1552 }
 0x183   :  { %v1555_v32 = vpop.eup %1554  ;;  %v603_v36 = vmul.f32 %v1553_v26, %v1881_v35 }
 0x184   :  { %1402 = vmatmul.mubr.msk.f32.gmra.mrb[20].mxu1 %vm63_vm0, %v758_v7  ;;  %v1557_v37 = vpop.eup %1556  ;;  %v604_v46 = vmul.f32 %v1555_v32, %v1888_v38 }
 0x185   :  { %v688_v17 = vpop.permute.xlu1 %687  ;;  %v690_v27 = vpop.permute.xlu0 %689  ;;  %1404 = vmatprep.mubr.msk.f32.mxu1 %vm63_vm0, %v759_v21  ;;  %v605_v50 = vmul.f32 %v1557_v37, %v1891_v39 }
 0x186   :  { %v760_v28 = vmul.f32 %v688_v17, %v600_v58  ;;  %v761_v29 = vmul.f32 %v690_v27, %v601_v59  ;;  %v1559_v42 = vpop.eup %1558 }
 0x187   :  { %v1561_v51 = vpop.eup %1560  ;;  %v606_v40 = vmul.f32 %v1559_v42, %v1901_v43  ;;  %v2011_v43 = vld [vmem:[%s2177_s4] ss:$0 sm:$0xff] }
 0x188   :  { %1405 = vmatmul.mubr.msk.f32.gmra.mrb[22].mxu1 %vm63_vm0, %v760_v28  ;;  %v607_v48 = vmul.f32 %v1561_v51, %v1904_v45 }
 0x189   :  { %v692_v10 = vpop.permute.xlu1 %691  ;;  %v694_v30 = vpop.permute.xlu0 %693  ;;  %1407 = vmatprep.mubr.msk.f32.mxu1 %vm63_vm0, %v761_v29 }
 0x18a   :  { %v762_v31 = vmul.f32 %v692_v10, %v602_v33  ;;  %v763_v11 = vmul.f32 %v694_v30, %v603_v36 }
 0x18b   :  { %v1563_v49 = vpop.eup %1562 }
 0x18c   :  { %1408 = vmatmul.mubr.msk.f32.gmra.mrb[24].mxu1 %vm63_vm0, %v762_v31  ;;  %v608_v15 = vmul.f32 %v1563_v49, %v1898_v41 }
 0x18d   :  { %v696_v62 = vpop.permute.xlu1 %695  ;;  %v698_v63 = vpop.permute.xlu0 %697  ;;  %1410 = vmatprep.mubr.msk.f32.mxu1 %vm63_vm0, %v763_v11 }
 0x18e   :  { %v764_v34 = vmul.f32 %v696_v62, %v604_v46  ;;  %v765_v35 = vmul.f32 %v698_v63, %v605_v50 }
 0x190   :  { %1411 = vmatmul.mubr.msk.f32.gmra.mrb[26].mxu1 %vm63_vm0, %v764_v34 }
 0x191   :  { %v700_v44 = vpop.permute.xlu1 %699  ;;  %v702_v14 = vpop.permute.xlu0 %701  ;;  %1413 = vmatprep.mubr.msk.f32.mxu1 %vm63_vm0, %v765_v35 }
 0x192   :  { %v766_v38 = vmul.f32 %v700_v44, %v606_v40  ;;  %v767_v39 = vmul.f32 %v702_v14, %v607_v48 }
 0x194   :  { %1414 = vmatmul.mubr.msk.f32.gmra.mrb[28].mxu1 %vm63_vm0, %v766_v38 }
 0x195   :  { %v704_v52 = vpop.permute.xlu1 %703  ;;  %1416 = vmatprep.mubr.msk.f32.mxu1 %vm63_vm0, %v767_v39 }
 0x196   :  { %v768_v53 = vmul.f32 %v704_v52, %v608_v15 }
 0x198   :  { %1417 = vmatmul.mubr.msk.f32.gmra.mrb[30].mxu1 %vm63_vm0, %v768_v53 }
 0x22f   :  { %v1373_v45 = vpop.f32.mrb[0].mxu1 }
 0x230   :  { %v948_v56 = vadd.f32 %v1373_v45, %v2011_v43  ;;  %v942_v57 = vpop.f32.mrb[1].mxu1 }
 0x231   :  { %v943_v60 = vadd.f32 %v2011_v43, %v942_v57 }
 0x232   :  { %1102 = vst.msk [vmem:[%s2178_s5 + $0x8] sm:$0xff] %vm63_vm0, %v948_v56 }
 0x233   :  { %1101 = vst.msk [vmem:[%s2178_s5] sm:$0xff] %vm63_vm0, %v943_v60  ;;  %v1376_v41 = vpop.f32.mrb[2].mxu1 }
 0x234   :  { %v958_v61 = vadd.f32 %v1376_v41, %v2011_v43  ;;  %v952_v0 = vpop.f32.mrb[3].mxu1 }
 0x235   :  { %v953_v1 = vadd.f32 %v2011_v43, %v952_v0 }
 0x236   :  { %1104 = vst.msk [vmem:[%s2178_s5 + $0x18] sm:$0xff] %vm63_vm0, %v958_v61 }
 0x237   :  { %1103 = vst.msk [vmem:[%s2178_s5 + $0x10] sm:$0xff] %vm63_vm0, %v953_v1  ;;  %v1379_v2 = vpop.f32.mrb[4].mxu1 }
 0x238   :  { %v968_v3 = vadd.f32 %v1379_v2, %v2011_v43  ;;  %v962_v18 = vpop.f32.mrb[5].mxu1 }
 0x239   :  { %v963_v19 = vadd.f32 %v2011_v43, %v962_v18 }
 0x23a   :  { %1106 = vst.msk [vmem:[%s2178_s5 + $0x28] sm:$0xff] %vm63_vm0, %v968_v3 }
 0x23b   :  { %1105 = vst.msk [vmem:[%s2178_s5 + $0x20] sm:$0xff] %vm63_vm0, %v963_v19  ;;  %v1382_v54 = vpop.f32.mrb[6].mxu1 }
 0x23c   :  { %v978_v55 = vadd.f32 %v1382_v54, %v2011_v43  ;;  %v972_v4 = vpop.f32.mrb[7].mxu1 }
 0x23d   :  { %v973_v5 = vadd.f32 %v2011_v43, %v972_v4 }
 0x23e   :  { %1108 = vst.msk [vmem:[%s2178_s5 + $0x38] sm:$0xff] %vm63_vm0, %v978_v55 }
 0x23f   :  { %1107 = vst.msk [vmem:[%s2178_s5 + $0x30] sm:$0xff] %vm63_vm0, %v973_v5  ;;  %v1385_v8 = vpop.f32.mrb[8].mxu1 }
 0x240   :  { %v988_v9 = vadd.f32 %v1385_v8, %v2011_v43  ;;  %v982_v12 = vpop.f32.mrb[9].mxu1 }
 0x241   :  { %v983_v13 = vadd.f32 %v2011_v43, %v982_v12 }
 0x242   :  { %1110 = vst.msk [vmem:[%s2178_s5 + $0x48] sm:$0xff] %vm63_vm0, %v988_v9 }
 0x243   :  { %1109 = vst.msk [vmem:[%s2178_s5 + $0x40] sm:$0xff] %vm63_vm0, %v983_v13  ;;  %v1388_v16 = vpop.f32.mrb[10].mxu1 }
 0x244   :  { %v998_v20 = vadd.f32 %v1388_v16, %v2011_v43  ;;  %v992_v22 = vpop.f32.mrb[11].mxu1 }
 0x245   :  { %v993_v23 = vadd.f32 %v2011_v43, %v992_v22 }
 0x246   :  { %1112 = vst.msk [vmem:[%s2178_s5 + $0x58] sm:$0xff] %vm63_vm0, %v998_v20 }
 0x247   :  { %1111 = vst.msk [vmem:[%s2178_s5 + $0x50] sm:$0xff] %vm63_vm0, %v993_v23  ;;  %v1391_v47 = vpop.f32.mrb[12].mxu1 }
 0x248   :  { %v1008_v6 = vadd.f32 %v1391_v47, %v2011_v43  ;;  %v1002_v7 = vpop.f32.mrb[13].mxu1 }
 0x249   :  { %v1003_v21 = vadd.f32 %v2011_v43, %v1002_v7 }
 0x24a   :  { %1114 = vst.msk [vmem:[%s2178_s5 + $0x68] sm:$0xff] %vm63_vm0, %v1008_v6 }
 0x24b   :  { %1113 = vst.msk [vmem:[%s2178_s5 + $0x60] sm:$0xff] %vm63_vm0, %v1003_v21  ;;  %v1394_v24 = vpop.f32.mrb[14].mxu1 }
 0x24c   :  { %v1018_v25 = vadd.f32 %v1394_v24, %v2011_v43  ;;  %v1012_v58 = vpop.f32.mrb[15].mxu1 }
 0x24d   :  { %v1013_v59 = vadd.f32 %v2011_v43, %v1012_v58 }
 0x24e   :  { %1116 = vst.msk [vmem:[%s2178_s5 + $0x78] sm:$0xff] %vm63_vm0, %v1018_v25 }
 0x24f   :  { %1115 = vst.msk [vmem:[%s2178_s5 + $0x70] sm:$0xff] %vm63_vm0, %v1013_v59  ;;  %v1397_v26 = vpop.f32.mrb[16].mxu1 }
 0x250   :  { %v1028_v17 = vadd.f32 %v1397_v26, %v2011_v43  ;;  %v1022_v27 = vpop.f32.mrb[17].mxu1 }
 0x251   :  { %v1023_v28 = vadd.f32 %v2011_v43, %v1022_v27 }
 0x252   :  { %1118 = vst.msk [vmem:[%s2178_s5 + $0x88] sm:$0xff] %vm63_vm0, %v1028_v17 }
 0x253   :  { %1117 = vst.msk [vmem:[%s2178_s5 + $0x80] sm:$0xff] %vm63_vm0, %v1023_v28  ;;  %v1400_v29 = vpop.f32.mrb[18].mxu1 }
 0x254   :  { %v1038_v32 = vadd.f32 %v1400_v29, %v2011_v43  ;;  %v1032_v33 = vpop.f32.mrb[19].mxu1 }
 0x255   :  { %v1033_v36 = vadd.f32 %v2011_v43, %v1032_v33 }
 0x256   :  { %1120 = vst.msk [vmem:[%s2178_s5 + $0x98] sm:$0xff] %vm63_vm0, %v1038_v32 }
 0x257   :  { %1119 = vst.msk [vmem:[%s2178_s5 + $0x90] sm:$0xff] %vm63_vm0, %v1033_v36  ;;  %v1403_v37 = vpop.f32.mrb[20].mxu1 }
 0x258   :  { %v1048_v10 = vadd.f32 %v1403_v37, %v2011_v43  ;;  %v1042_v30 = vpop.f32.mrb[21].mxu1 }
 0x259   :  { %v1043_v31 = vadd.f32 %v2011_v43, %v1042_v30 }
 0x25a   :  { %1122 = vst.msk [vmem:[%s2178_s5 + $0xa8] sm:$0xff] %vm63_vm0, %v1048_v10 }
 0x25b   :  { %1121 = vst.msk [vmem:[%s2178_s5 + $0xa0] sm:$0xff] %vm63_vm0, %v1043_v31  ;;  %v1406_v11 = vpop.f32.mrb[22].mxu1 }
 0x25c   :  { %v1058_v42 = vadd.f32 %v1406_v11, %v2011_v43  ;;  %v1052_v46 = vpop.f32.mrb[23].mxu1 }
 0x25d   :  { %v1053_v50 = vadd.f32 %v2011_v43, %v1052_v46 }
 0x25e   :  { %1124 = vst.msk [vmem:[%s2178_s5 + $0xb8] sm:$0xff] %vm63_vm0, %v1058_v42 }
 0x25f   :  { %1123 = vst.msk [vmem:[%s2178_s5 + $0xb0] sm:$0xff] %vm63_vm0, %v1053_v50  ;;  %v1409_v51 = vpop.f32.mrb[24].mxu1 }
 0x260   :  { %v1068_v62 = vadd.f32 %v1409_v51, %v2011_v43  ;;  %v1062_v63 = vpop.f32.mrb[25].mxu1 }
 0x261   :  { %v1063_v34 = vadd.f32 %v2011_v43, %v1062_v63 }
 0x262   :  { %1126 = vst.msk [vmem:[%s2178_s5 + $0xc8] sm:$0xff] %vm63_vm0, %v1068_v62 }
 0x263   :  { %1125 = vst.msk [vmem:[%s2178_s5 + $0xc0] sm:$0xff] %vm63_vm0, %v1063_v34  ;;  %v1412_v35 = vpop.f32.mrb[26].mxu1 }
 0x264   :  { %v1078_v40 = vadd.f32 %v1412_v35, %v2011_v43  ;;  %v1072_v48 = vpop.f32.mrb[27].mxu1 }
 0x265   :  { %v1073_v49 = vadd.f32 %v2011_v43, %v1072_v48 }
 0x266   :  { %1128 = vst.msk [vmem:[%s2178_s5 + $0xd8] sm:$0xff] %vm63_vm0, %v1078_v40 }
 0x267   :  { %1127 = vst.msk [vmem:[%s2178_s5 + $0xd0] sm:$0xff] %vm63_vm0, %v1073_v49  ;;  %v1415_v44 = vpop.f32.mrb[28].mxu1 }
 0x268   :  { %v1088_v14 = vadd.f32 %v1415_v44, %v2011_v43  ;;  %v1082_v38 = vpop.f32.mrb[29].mxu1 }
 0x269   :  { %v1083_v39 = vadd.f32 %v2011_v43, %v1082_v38 }
 0x26a   :  { %1130 = vst.msk [vmem:[%s2178_s5 + $0xe8] sm:$0xff] %vm63_vm0, %v1088_v14 }
 0x26b   :  { %1129 = vst.msk [vmem:[%s2178_s5 + $0xe0] sm:$0xff] %vm63_vm0, %v1083_v39  ;;  %v1418_v15 = vpop.f32.mrb[30].mxu1 }
 0x26c   :  { %v1098_v52 = vadd.f32 %v1418_v15, %v2011_v43  ;;  %v1092_v53 = vpop.f32.mrb[31].mxu1 }
 0x26d   :  { %v1093_v45 = vadd.f32 %v2011_v43, %v1092_v53 }
 0x26e   :  { %1132 = vst.msk [vmem:[%s2178_s5 + $0xf8] sm:$0xff] %vm63_vm0, %v1098_v52 }
 0x26f   :  { %1131 = vst.msk [vmem:[%s2178_s5 + $0xf0] sm:$0xff] %vm63_vm0, %v1093_v45 }

</bundles_post_ra>
